<compile_context>
chip_gen: v6e
topology: v6e:2x2x1
jax: 0.10.0
libtpu: 0.0.40
codegen_flags: <defaults>
</compile_context>

<pallas_src>
import jax
import jax.numpy as jnp
from jax.experimental import pallas as pl
from jax.experimental.pallas import tpu as pltpu


def linear_kernel(xT_ref, w_ref, b_ref, o_ref):
    """VPU-only linear layer on the transposed (lane-dense) problem.

    xT_ref: (IN, TB)  VMEM  -- input features, batch on the lane (last) axis
    w_ref : (OUT, IN) SMEM  -- weight scalars
    b_ref : (OUT,)    SMEM  -- bias scalars
    o_ref : (OUT, TB) VMEM  -- lane-dense output (batch on lanes)
    """
    in_features = xT_ref.shape[0]
    out_features = o_ref.shape[0]
    for j in range(out_features):          # OUT = 1 for this module; static unroll
        acc = xT_ref[0:1, :] * w_ref[j, 0]
        for k in range(1, in_features):    # IN = 5; static unroll, pure VPU FMA chain
            acc = acc + xT_ref[k:k + 1, :] * w_ref[j, k]
        o_ref[j:j + 1, :] = (acc + b_ref[j]).astype(o_ref.dtype)


def linear_forward(x, weight, bias):
    """y = x @ weight.T + bias, matching torch.nn.Linear(5, 1).

    x: (B, IN), weight: (OUT, IN), bias: (OUT,) -> (B, OUT)
    """
    B, IN = x.shape
    OUT = weight.shape[0]

    # Lane-dense layout plumbing happens in the wrapper, not the kernel.
    xT = x.T  # (IN, B): batch on the last (lane) axis

    # Large lane-dense batch tiles when B is big; a single block otherwise (B=8 demo).
    TB = 512 if (B % 512 == 0) else B
    grid = (B // TB,)

    yT = pl.pallas_call(
        linear_kernel,
        out_shape=jax.ShapeDtypeStruct((OUT, B), x.dtype),
        grid=grid,
        in_specs=[
            pl.BlockSpec((IN, TB), lambda i: (0, i)),                  # x^T tile in VMEM
            pl.BlockSpec(memory_space=pltpu.MemorySpace.SMEM),          # weight scalars
            pl.BlockSpec(memory_space=pltpu.MemorySpace.SMEM),          # bias scalar(s)
        ],
        out_specs=pl.BlockSpec((OUT, TB), lambda i: (0, i)),
        compiler_params=pltpu.CompilerParams(
            dimension_semantics=("parallel",)),                         # v7x: 2 TCs share the batch grid
        cost_estimate=pl.CostEstimate(
            flops=2 * B * IN * OUT,
            bytes_accessed=4 * (B * IN + OUT * IN + OUT + B * OUT),
            transcendentals=0),
    )(xT, weight, bias)

    return yT.T  # (B, OUT): PyTorch nn.Linear output layout


if __name__ == "__main__":
    key = jax.random.PRNGKey(0)
    kx, kw, kb = jax.random.split(key, 3)

    B, IN_FEATURES, OUT_FEATURES = 8, 5, 1

    # Deterministic parameter init (mimics nn.Linear's uniform(-1/sqrt(in), 1/sqrt(in)))
    bound = 1.0 / jnp.sqrt(jnp.float32(IN_FEATURES))
    weight = jax.random.uniform(kw, (OUT_FEATURES, IN_FEATURES),
                                dtype=jnp.float32, minval=-bound, maxval=bound)
    bias = jax.random.uniform(kb, (OUT_FEATURES,),
                              dtype=jnp.float32, minval=-bound, maxval=bound)

    x = jax.random.normal(kx, (B, IN_FEATURES), dtype=jnp.float32)

    y = jax.block_until_ready(linear_forward(x, weight, bias))

    # Reference check against plain JAX
    y_ref = x @ weight.T + bias[None, :]
    assert y.shape == (B, OUT_FEATURES)
    assert jnp.allclose(y, y_ref, atol=1e-5, rtol=1e-5)

    print("KERNEL_OK")
</pallas_src>

<mosaic_0001>
module attributes {stable_mosaic.version = 11 : i64} {
  func.func @linear_kernel(%arg0: i32, %arg1: memref<5x8xf32, #tpu.memory_space<vmem>>, %arg2: memref<1x5xf32, #tpu.memory_space<smem>>, %arg3: memref<1xf32, #tpu.memory_space<smem>>, %arg4: memref<1x8xf32, #tpu.memory_space<vmem>>) attributes {dimension_semantics = [#tpu.dimension_semantics<parallel>], iteration_bounds = array<i64: 1>, scalar_prefetch = 0 : i64, scratch_operands = 0 : i64, tpu.core_type = #tpu.core_type<tc>, window_params = [{transform_indices = @transform_0, window_bounds = array<i64: 5, 8>}, {transform_indices = @transform_1, window_bounds = array<i64: 1, 5>}, {transform_indices = @transform_2, window_bounds = array<i64: 1>}, {transform_indices = @transform_3, window_bounds = array<i64: 1, 8>}]} {
    %c0 = arith.constant 0 : index
    %c0_0 = arith.constant 0 : index
    %0 = vector.load %arg1[%c0, %c0_0] : memref<5x8xf32, #tpu.memory_space<vmem>>, vector<1x8xf32>
    %c0_1 = arith.constant 0 : index
    %c0_2 = arith.constant 0 : index
    %1 = memref.load %arg2[%c0_1, %c0_2] : memref<1x5xf32, #tpu.memory_space<smem>>
    %2 = vector.broadcast %1 : f32 to vector<1x8xf32>
    %3 = arith.mulf %0, %2 : vector<1x8xf32>
    %c1 = arith.constant 1 : index
    %c0_3 = arith.constant 0 : index
    %4 = vector.load %arg1[%c1, %c0_3] : memref<5x8xf32, #tpu.memory_space<vmem>>, vector<1x8xf32>
    %c0_4 = arith.constant 0 : index
    %c1_5 = arith.constant 1 : index
    %5 = memref.load %arg2[%c0_4, %c1_5] : memref<1x5xf32, #tpu.memory_space<smem>>
    %6 = vector.broadcast %5 : f32 to vector<1x8xf32>
    %7 = arith.mulf %4, %6 : vector<1x8xf32>
    %8 = arith.addf %3, %7 : vector<1x8xf32>
    %c2 = arith.constant 2 : index
    %c0_6 = arith.constant 0 : index
    %9 = vector.load %arg1[%c2, %c0_6] : memref<5x8xf32, #tpu.memory_space<vmem>>, vector<1x8xf32>
    %c0_7 = arith.constant 0 : index
    %c2_8 = arith.constant 2 : index
    %10 = memref.load %arg2[%c0_7, %c2_8] : memref<1x5xf32, #tpu.memory_space<smem>>
    %11 = vector.broadcast %10 : f32 to vector<1x8xf32>
    %12 = arith.mulf %9, %11 : vector<1x8xf32>
    %13 = arith.addf %8, %12 : vector<1x8xf32>
    %c3 = arith.constant 3 : index
    %c0_9 = arith.constant 0 : index
    %14 = vector.load %arg1[%c3, %c0_9] : memref<5x8xf32, #tpu.memory_space<vmem>>, vector<1x8xf32>
    %c0_10 = arith.constant 0 : index
    %c3_11 = arith.constant 3 : index
    %15 = memref.load %arg2[%c0_10, %c3_11] : memref<1x5xf32, #tpu.memory_space<smem>>
    %16 = vector.broadcast %15 : f32 to vector<1x8xf32>
    %17 = arith.mulf %14, %16 : vector<1x8xf32>
    %18 = arith.addf %13, %17 : vector<1x8xf32>
    %c4 = arith.constant 4 : index
    %c0_12 = arith.constant 0 : index
    %19 = vector.load %arg1[%c4, %c0_12] : memref<5x8xf32, #tpu.memory_space<vmem>>, vector<1x8xf32>
    %c0_13 = arith.constant 0 : index
    %c4_14 = arith.constant 4 : index
    %20 = memref.load %arg2[%c0_13, %c4_14] : memref<1x5xf32, #tpu.memory_space<smem>>
    %21 = vector.broadcast %20 : f32 to vector<1x8xf32>
    %22 = arith.mulf %19, %21 : vector<1x8xf32>
    %23 = arith.addf %18, %22 : vector<1x8xf32>
    %c0_15 = arith.constant 0 : index
    %24 = memref.load %arg3[%c0_15] : memref<1xf32, #tpu.memory_space<smem>>
    %25 = vector.broadcast %24 : f32 to vector<1x8xf32>
    %26 = arith.addf %23, %25 : vector<1x8xf32>
    %c0_16 = arith.constant 0 : index
    %c0_17 = arith.constant 0 : index
    %27 = vector.load %arg4[%c0_16, %c0_17] : memref<1x8xf32, #tpu.memory_space<vmem>>, vector<1x8xf32>
    tpu.vector_store %arg4[%c0_16, %c0_17], %26 {strides = array<i32>} : memref<1x8xf32, #tpu.memory_space<vmem>>, vector<1x8xf32>,
    return
  }
  func.func @transform_0(%arg0: i32) -> (i32, i32) {
    %c0_i32 = arith.constant 0 : i32
    %c0_i32_0 = arith.constant 0 : i32
    return %c0_i32, %arg0 : i32, i32
  }
  func.func @transform_1(%arg0: i32) -> (i32, i32) {
    %c0_i32 = arith.constant 0 : i32
    %c0_i32_0 = arith.constant 0 : i32
    %c0_i32_1 = arith.constant 0 : i32
    return %c0_i32, %c0_i32_0 : i32, i32
  }
  func.func @transform_2(%arg0: i32) -> i32 {
    %c0_i32 = arith.constant 0 : i32
    %c0_i32_0 = arith.constant 0 : i32
    return %c0_i32 : i32
  }
  func.func @transform_3(%arg0: i32) -> (i32, i32) {
    %c0_i32 = arith.constant 0 : i32
    %c0_i32_0 = arith.constant 0 : i32
    return %c0_i32, %arg0 : i32, i32
  }
}

</mosaic_0001>

<bundles_post_ra>
// kernel: tpu_custom_call.1
= control target key start
LH: loop header
LB: loop body
LE: loop exit
PB: predicated region body
PF: predicated region fallthrough
CT: control target
= control target key end

     0   :  { %9 = vsyncpa [#allocation4], 0  ;;  %s186_s0 = inlined_call_operand.hbm [shape: f32[5,8], index: 0, kind: input, shape index: {}]   ;;  %s187_s1 = inlined_call_operand.vmem [shape: f32[1,5], index: 1, kind: input, shape index: {}]   ;;  %s188_s2 = inlined_call_operand.<no memory space> [shape: f32[1], index: 2, kind: input, shape index: {}]   ;;  %s189_s3 = inlined_call_operand.hbm [shape: f32[1,8], index: 3, kind: output, shape index: {}]  }
   0x1   :  { %10 = vsyncpa [#allocation6], 0 }
   0x2   :  { %11 = vsyncpa [#allocation5], 0  ;;  %s28_s14 = sshll.u32 %s187_s1, 4  ;;  %s151_s15 = smov [#allocation3]   ;;  %s29_s14 = int_to_ptr.vmem [resolvable:$true] %s28_s14 }
   0x3   :  { %s18_s16 = sshll.u32 %s151_s15, 4  ;;  %s19_s16 = int_to_ptr.vmem [resolvable:$true] %s18_s16 }
   0x4   :  { %s101_s17 = scalar_lea.vmem %s19_s16, 128  ;;  %p106_p1 = scmp.lt.s32.totalorder %s19_s16, %s19_s16 }
   0x5   :  { %p102_p0 = scmp.ne.s32.totalorder %s19_s16, %s101_s17  ;;  %p107_p2 = scmp.lt.s32.totalorder %s101_s17, %s101_s17 }
   0x7   :  { %p108_p3 = por %p107_p2, %p106_p1 }
   0x9   :  { %p109_p4 = pnand %p108_p3, %p102_p0 }
   0xb   :  { %112 = shalt.err (!%p109_p4)
}
   0xc   :  { %21 = dma.hbm_to_vmem [thread:$0]  %s186_s0, 128, %s19_s16, [#allocation4]  }
   0xd   :  { %s113_s20 = scalar_lea.vmem %s29_s14, 16  ;;  %p118_p6 = scmp.lt.s32.totalorder %s29_s14, %s29_s14 }
   0xe   :  { %p114_p5 = scmp.ne.s32.totalorder %s29_s14, %s113_s20  ;;  %p119_p7 = scmp.lt.s32.totalorder %s113_s20, %s113_s20 }
  0x10   :  { %p120_p8 = por %p119_p7, %p118_p6 }
  0x12   :  { %p121_p9 = pnand %p120_p8, %p114_p5 }
  0x14   :  { %124 = shalt.err (!%p121_p9)
}
  0x15   :  { %s152_s1 = smov [#allocation7]  }
  0x16   :  { %31 = dma.vmem_to_smem %s29_s14, 16, %s152_s1, [#allocation6]  }
  0x17   :  { %145 = dma.done.wait [#allocation4], 128  }
  0x18   :  { %146 = vsyncadd [#allocation4], 4294967168 }
  0x19   :  { %147 = dma.done.wait [#allocation6], 16  }
  0x1a   :  { %148 = vsyncadd [#allocation6], 4294967280 }
  0x1b   :  { %40 = sfence }
  0x1c   :  { %s42_s21 = sld [smem:[#allocation7]]  ;;  %v41_v0 = vld [vmem:[#allocation3] sm:$0x1]  ;;  %v45_v1 = vld [vmem:[#allocation3 + $0x1] sm:$0x1]  ;;  %v66_v18 = vstv %s188_s2  ;;  %s153_s27 = smov [#allocation8]  }
  0x1d   :  { %s86_s22 = sld [smem:[#allocation7 + $0x1]]  ;;  %v50_v3 = vld [vmem:[#allocation3 + $0x2] sm:$0x1]  ;;  %v55_v6 = vld [vmem:[#allocation3 + $0x3] sm:$0x1]  ;;  %s76_s28 = sshll.u32 %s153_s27, 4  ;;  %s77_s28 = int_to_ptr.vmem [resolvable:$true] %s76_s28 }
  0x1e   :  { %s87_s23 = sld [smem:[#allocation7 + $0x2]]  ;;  %v60_v11 = vld [vmem:[#allocation3 + $0x4] sm:$0x1]  ;;  %vm68_vm0 = vcmask 57344   ;;  %s125_s29 = scalar_lea.vmem %s77_s28, 16 }
  0x1f   :  { %s88_s24 = sld [smem:[#allocation7 + $0x3]]  ;;  %p126_p10 = scmp.ne.s32.totalorder %s77_s28, %s125_s29 }
  0x20   :  { %s89_s0 = sld [smem:[#allocation7 + $0x4]]  ;;  %s129_s30 = scalar_lea.vmem %s77_s28, 32 }
  0x21   :  { %p130_p11 = scmp.lt.s32.totalorder %s77_s28, %s77_s28  ;;  %p131_p12 = scmp.lt.s32.totalorder %s129_s30, %s125_s29 }
  0x22   :  { %v43_v2 = vstv %s42_s21 }
  0x23   :  { %v44_v4 = vmul.f32 %v43_v2, %v41_v0  ;;  %v47_v5 = vstv %s86_s22  ;;  %p132_p13 = por %p131_p12, %p130_p11 }
  0x24   :  { %v48_v7 = vmul.f32 %v47_v5, %v45_v1  ;;  %v52_v8 = vstv %s87_s23 }
  0x25   :  { %v53_v9 = vmul.f32 %v52_v8, %v50_v3  ;;  %v57_v10 = vstv %s88_s24  ;;  %p133_p0 = pnand %p132_p13, %p126_p10 }
  0x26   :  { %v49_v12 = vadd.f32 %v48_v7, %v44_v4  ;;  %v58_v13 = vmul.f32 %v57_v10, %v55_v6  ;;  %v62_v14 = vstv %s89_s0 }
  0x27   :  { %v63_v16 = vmul.f32 %v62_v14, %v60_v11 }
  0x28   :  { %v54_v15 = vadd.f32 %v53_v9, %v49_v12 }
  0x2a   :  { %v59_v17 = vadd.f32 %v58_v13, %v54_v15 }
  0x2c   :  { %v64_v19 = vadd.f32 %v63_v16, %v59_v17 }
  0x2e   :  { %v67_v20 = vadd.f32 %v66_v18, %v64_v19 }
  0x30   :  { %69 = vst.msk [vmem:[#allocation8] sm:$0x1] %vm68_vm0, %v67_v20 }
  0x31   :  { %136 = shalt.err (!%p133_p0)
}
  0x32   :  { %79 = dma.vmem_to_hbm [thread:$0]  %s77_s28, 16, %s189_s3, [#allocation5]  }
  0x33   :  { %149 = dma.done.wait [#allocation5], 16  }
  0x34   :  { %150 = vsyncadd [#allocation5], 4294967280 }
  0x35   :  { %83 = vsyncpa [#allocation4], 1 }
  0x36   :  { %84 = vsyncpa [#allocation5], 1 }
  0x37   :  { %85 = vsyncpa [#allocation6], 1 }

</bundles_post_ra>
